<compile_context>
chip_gen: v7x
topology: tpu7x:2x2x1
jax: 0.10.0
libtpu: 0.0.40
codegen_flags: <defaults>
</compile_context>

<pallas_src>
import functools

import jax
import jax.numpy as jnp
from jax.experimental import pallas as pl
from jax.experimental.pallas import tpu as pltpu


def _round_up(x: int, m: int) -> int:
    return ((x + m - 1) // m) * m


def _mlp_kernel(x_ref, w1_ref, b1_ref, w2_ref, b2_ref, w3_ref, b3_ref, o_ref,
                *, action_size: int, apply_tanh_gate: bool):
    # x tile: (TB, D_in) f32; weights: bf16 (in, out); biases: f32 (1, out).
    x = x_ref[...].astype(jnp.bfloat16)

    # Layer 1: MXU matmul (f32 acc) + bias/ReLU in f32, result carried as bf16.
    h1 = jnp.maximum(
        jnp.dot(x, w1_ref[...], preferred_element_type=jnp.float32) + b1_ref[...],
        0.0).astype(jnp.bfloat16)

    # Layer 2.
    h2 = jnp.maximum(
        jnp.dot(h1, w2_ref[...], preferred_element_type=jnp.float32) + b2_ref[...],
        0.0).astype(jnp.bfloat16)

    # Layer 3: computed on 128 padded lanes (clean MXU shape), stored narrow.
    out = jnp.dot(h2, w3_ref[...], preferred_element_type=jnp.float32) + b3_ref[...]

    if apply_tanh_gate:                       # output_gate (tanh, EUP)
        out = jnp.tanh(out)

    # Narrow store: only the real action columns go back to HBM.
    o_ref[...] = out[:, :action_size].astype(o_ref.dtype)


def fc_network_forward(x, params, output_gate=None, *, batch_tile=2048):
    """Fused forward pass of FCNetwork.

    x:       (B, state_size * 2) float32
    params:  dict with w1 (D_in,256), b1 (1,256), w2 (256,256), b2 (1,256),
             w3 (256,A), b3 (1,A)   -- float32, (in, out) layout
             (transpose of PyTorch nn.Linear's (out, in)).
    output_gate: None or "tanh"
    """
    w1 = params["w1"].astype(jnp.bfloat16)
    w2 = params["w2"].astype(jnp.bfloat16)
    w3 = params["w3"].astype(jnp.bfloat16)
    b1 = params["b1"].astype(jnp.float32)
    b2 = params["b2"].astype(jnp.float32)
    b3 = params["b3"].astype(jnp.float32)

    B, D_in = x.shape
    H = w1.shape[1]
    A = w3.shape[1]

    # --- pad only the final weight/bias to 128 lanes (MXU-friendly) ---------
    A_pad = _round_up(max(A, 128), 128)
    w3p = jnp.zeros((H, A_pad), jnp.bfloat16).at[:, :A].set(w3)
    b3p = jnp.zeros((1, A_pad), jnp.float32).at[:, :A].set(b3)

    # --- batch tiling --------------------------------------------------------
    # Big tiles to amortize per-step overhead, but at least 2 tiles for large
    # batches so v7x's two TensorCores both get work. Ragged final block is
    # masked by Pallas (no wrapper-side pad/copy of x).
    TB = min(int(batch_tile), _round_up(max(-(-B // 2), 1), 256))
    TB = max(8, _round_up(TB, 8))
    grid = (pl.cdiv(B, TB),)

    kernel = functools.partial(_mlp_kernel,
                               action_size=A,
                               apply_tanh_gate=(output_gate == "tanh"))

    # Constant index_maps for weights/biases -> loaded once, VMEM-resident.
    const = lambda arr: pl.BlockSpec(arr.shape, lambda i: (0,) * arr.ndim)

    flops = 2 * B * (D_in * H + H * H + H * A_pad)
    bytes_accessed = (x.size * 4 + B * A * 4
                      + (w1.size + w2.size + w3p.size) * 2
                      + (b1.size + b2.size + b3p.size) * 4)
    transcendentals = B * A_pad if output_gate == "tanh" else 0

    # Default scoped VMEM (16 MiB on v5e) covers TB <= 2048 comfortably; only
    # raise the limit when the caller asks for a bigger tile.
    vmem_limit = (96 * 1024 * 1024) if TB > 2048 else None

    out = pl.pallas_call(
        kernel,
        out_shape=jax.ShapeDtypeStruct((B, A), jnp.float32),
        grid_spec=pltpu.PrefetchScalarGridSpec(
            num_scalar_prefetch=0,
            grid=grid,
            in_specs=[
                pl.BlockSpec((TB, D_in), lambda i: (i, 0)),    # x tile
                const(w1), const(b1),
                const(w2), const(b2),
                const(w3p), const(b3p),
            ],
            out_specs=pl.BlockSpec((TB, A), lambda i: (i, 0)),  # narrow output
        ),
        compiler_params=pltpu.CompilerParams(
            dimension_semantics=("parallel",),
            vmem_limit_bytes=vmem_limit),
        cost_estimate=pl.CostEstimate(flops=flops,
                                      transcendentals=transcendentals,
                                      bytes_accessed=bytes_accessed),
    )(x, w1, b1, w2, b2, w3p, b3p)

    return out


def init_fc_network_params(key, state_size, action_size, hidden=256,
                           dtype=jnp.float32):
    """Deterministic init mirroring the PyTorch module's __init__.

    Note: hidden_init() in the reference uses weight.size()[0] (= out_features)
    as fan_in; we reproduce that convention. Biases use nn.Linear's default
    U(-1/sqrt(in_features), 1/sqrt(in_features)).
    """
    d_in = state_size * 2
    k = jax.random.split(key, 6)

    lim1 = 1.0 / jnp.sqrt(jnp.float32(hidden))   # fan_in = out_features (as in ref)
    lim2 = 1.0 / jnp.sqrt(jnp.float32(hidden))
    lim3 = 0.003

    w1 = jax.random.uniform(k[0], (d_in, hidden), dtype, -lim1, lim1)
    b1 = jax.random.uniform(k[1], (1, hidden), dtype,
                            -1.0 / jnp.sqrt(jnp.float32(d_in)),
                            1.0 / jnp.sqrt(jnp.float32(d_in)))
    w2 = jax.random.uniform(k[2], (hidden, hidden), dtype, -lim2, lim2)
    b2 = jax.random.uniform(k[3], (1, hidden), dtype,
                            -1.0 / jnp.sqrt(jnp.float32(hidden)),
                            1.0 / jnp.sqrt(jnp.float32(hidden)))
    w3 = jax.random.uniform(k[4], (hidden, action_size), dtype, -lim3, lim3)
    b3 = jax.random.uniform(k[5], (1, action_size), dtype,
                            -1.0 / jnp.sqrt(jnp.float32(hidden)),
                            1.0 / jnp.sqrt(jnp.float32(hidden)))
    return {"w1": w1, "b1": b1, "w2": w2, "b2": b2, "w3": w3, "b3": b3}


def fc_network_ref(x, params, output_gate=None):
    """Plain-JAX f32 reference for correctness checking."""
    h1 = jnp.maximum(x @ params["w1"] + params["b1"], 0.0)
    h2 = jnp.maximum(h1 @ params["w2"] + params["b2"], 0.0)
    out = h2 @ params["w3"] + params["b3"]
    if output_gate == "tanh":
        out = jnp.tanh(out)
    return out


if __name__ == "__main__":
    key = jax.random.PRNGKey(0)
    state_size = 16           # -> input dim = state_size * 2 = 32
    action_size = 4

    pkey, xkey1, xkey2 = jax.random.split(key, 3)
    params = init_fc_network_params(pkey, state_size, action_size)

    # Tolerance is loosened vs. the f32 reference because matmul inputs are bf16.
    TOL = dict(atol=2e-2, rtol=2e-2)

    # Case 1: small batch, no gate (single grid tile, partial block).
    batch = 8
    x = jax.random.normal(xkey1, (batch, state_size * 2), jnp.float32)
    out = jax.block_until_ready(fc_network_forward(x, params, output_gate=None))
    ref = fc_network_ref(x, params, output_gate=None)
    assert out.shape == (batch, action_size), out.shape
    assert jnp.allclose(out, ref, **TOL), "mismatch vs reference (no gate)"

    # Case 2: multi-tile grid with a ragged final block + tanh output gate.
    batch2 = 130
    x2 = jax.random.normal(xkey2, (batch2, state_size * 2), jnp.float32)
    out2 = jax.block_until_ready(
        fc_network_forward(x2, params, output_gate="tanh", batch_tile=64))
    ref2 = fc_network_ref(x2, params, output_gate="tanh")
    assert out2.shape == (batch2, action_size), out2.shape
    assert jnp.allclose(out2, ref2, **TOL), "mismatch vs reference (tanh gate)"

    print("KERNEL_OK")
</pallas_src>

<mosaic_0001>
module attributes {stable_mosaic.version = 11 : i64} {
  func.func @_mlp_kernel(%arg0: i32, %arg1: memref<256x32xf32, #tpu.memory_space<vmem>>, %arg2: memref<32x256xbf16, #tpu.memory_space<vmem>>, %arg3: memref<1x256xf32, #tpu.memory_space<vmem>>, %arg4: memref<256x256xbf16, #tpu.memory_space<vmem>>, %arg5: memref<1x256xf32, #tpu.memory_space<vmem>>, %arg6: memref<256x128xbf16, #tpu.memory_space<vmem>>, %arg7: memref<1x128xf32, #tpu.memory_space<vmem>>, %arg8: memref<256x4xf32, #tpu.memory_space<vmem>>) attributes {dimension_semantics = [#tpu.dimension_semantics<parallel>], iteration_bounds = array<i64: 1>, scalar_prefetch = 0 : i64, scratch_operands = 0 : i64, tpu.core_type = #tpu.core_type<tc>, window_params = [{transform_indices = @transform_0, window_bounds = array<i64: 256, 32>}, {pipeline_mode = #tpu.pipeline_mode<synchronous>, transform_indices = @transform_1, window_bounds = array<i64: 32, 256>}, {pipeline_mode = #tpu.pipeline_mode<synchronous>, transform_indices = @transform_2, window_bounds = array<i64: 1, 256>}, {pipeline_mode = #tpu.pipeline_mode<synchronous>, transform_indices = @transform_3, window_bounds = array<i64: 256, 256>}, {pipeline_mode = #tpu.pipeline_mode<synchronous>, transform_indices = @transform_4, window_bounds = array<i64: 1, 256>}, {pipeline_mode = #tpu.pipeline_mode<synchronous>, transform_indices = @transform_5, window_bounds = array<i64: 256, 128>}, {pipeline_mode = #tpu.pipeline_mode<synchronous>, transform_indices = @transform_6, window_bounds = array<i64: 1, 128>}, {transform_indices = @transform_7, window_bounds = array<i64: 256, 4>}]} {
    %c0 = arith.constant 0 : index
    %c0_0 = arith.constant 0 : index
    %0 = vector.load %arg1[%c0, %c0_0] : memref<256x32xf32, #tpu.memory_space<vmem>>, vector<256x32xf32>
    %1 = arith.truncf %0 : vector<256x32xf32> to vector<256x32xbf16>
    %c0_1 = arith.constant 0 : index
    %c0_2 = arith.constant 0 : index
    %2 = vector.load %arg2[%c0_1, %c0_2] : memref<32x256xbf16, #tpu.memory_space<vmem>>, vector<32x256xbf16>
    %cst = arith.constant dense<0.000000e+00> : vector<256x256xf32>
    %3 = tpu.matmul %1, %2, %cst {dimension_numbers = #tpu.dot_dimension_numbers<[1], [0], [0], [1], [0, 0, 1, 1], [], []>} : vector<256x32xbf16>, vector<32x256xbf16>, vector<256x256xf32> -> vector<256x256xf32>
    %c0_3 = arith.constant 0 : index
    %c0_4 = arith.constant 0 : index
    %4 = vector.load %arg3[%c0_3, %c0_4] : memref<1x256xf32, #tpu.memory_space<vmem>>, vector<1x256xf32>
    %5 = vector.broadcast %4 : vector<1x256xf32> to vector<256x256xf32>
    %6 = arith.addf %3, %5 : vector<256x256xf32>
    %cst_5 = arith.constant 0.000000e+00 : f32
    %7 = vector.broadcast %cst_5 : f32 to vector<256x256xf32>
    %8 = arith.maximumf %6, %7 : vector<256x256xf32>
    %9 = arith.truncf %8 : vector<256x256xf32> to vector<256x256xbf16>
    %c0_6 = arith.constant 0 : index
    %c0_7 = arith.constant 0 : index
    %10 = vector.load %arg4[%c0_6, %c0_7] : memref<256x256xbf16, #tpu.memory_space<vmem>>, vector<256x256xbf16>
    %cst_8 = arith.constant dense<0.000000e+00> : vector<256x256xf32>
    %11 = tpu.matmul %9, %10, %cst_8 {dimension_numbers = #tpu.dot_dimension_numbers<[1], [0], [0], [1], [0, 0, 1, 1], [], []>} : vector<256x256xbf16>, vector<256x256xbf16>, vector<256x256xf32> -> vector<256x256xf32>
    %c0_9 = arith.constant 0 : index
    %c0_10 = arith.constant 0 : index
    %12 = vector.load %arg5[%c0_9, %c0_10] : memref<1x256xf32, #tpu.memory_space<vmem>>, vector<1x256xf32>
    %13 = vector.broadcast %12 : vector<1x256xf32> to vector<256x256xf32>
    %14 = arith.addf %11, %13 : vector<256x256xf32>
    %cst_11 = arith.constant 0.000000e+00 : f32
    %15 = vector.broadcast %cst_11 : f32 to vector<256x256xf32>
    %16 = arith.maximumf %14, %15 : vector<256x256xf32>
    %17 = arith.truncf %16 : vector<256x256xf32> to vector<256x256xbf16>
    %c0_12 = arith.constant 0 : index
    %c0_13 = arith.constant 0 : index
    %18 = vector.load %arg6[%c0_12, %c0_13] : memref<256x128xbf16, #tpu.memory_space<vmem>>, vector<256x128xbf16>
    %cst_14 = arith.constant dense<0.000000e+00> : vector<256x128xf32>
    %19 = tpu.matmul %17, %18, %cst_14 {dimension_numbers = #tpu.dot_dimension_numbers<[1], [0], [0], [1], [0, 0, 1, 1], [], []>} : vector<256x256xbf16>, vector<256x128xbf16>, vector<256x128xf32> -> vector<256x128xf32>
    %c0_15 = arith.constant 0 : index
    %c0_16 = arith.constant 0 : index
    %20 = vector.load %arg7[%c0_15, %c0_16] : memref<1x128xf32, #tpu.memory_space<vmem>>, vector<1x128xf32>
    %21 = vector.broadcast %20 : vector<1x128xf32> to vector<256x128xf32>
    %22 = arith.addf %19, %21 : vector<256x128xf32>
    %23 = vector.extract_strided_slice %22 {offsets = [0, 0], sizes = [256, 4], strides = [1, 1]} : vector<256x128xf32> to vector<256x4xf32>
    %c0_17 = arith.constant 0 : index
    %c0_18 = arith.constant 0 : index
    %24 = vector.load %arg8[%c0_17, %c0_18] : memref<256x4xf32, #tpu.memory_space<vmem>>, vector<256x4xf32>
    tpu.vector_store %arg8[%c0_17, %c0_18], %23 {strides = array<i32>} : memref<256x4xf32, #tpu.memory_space<vmem>>, vector<256x4xf32>,
    return
  }
  func.func @transform_0(%arg0: i32) -> (i32, i32) {
    %c0_i32 = arith.constant 0 : i32
    %c0_i32_0 = arith.constant 0 : i32
    return %arg0, %c0_i32 : i32, i32
  }
  func.func @transform_1(%arg0: i32) -> (i32, i32) {
    %c0_i32 = arith.constant 0 : i32
    %c0_i32_0 = arith.constant 0 : i32
    %c0_i32_1 = arith.constant 0 : i32
    return %c0_i32, %c0_i32_0 : i32, i32
  }
  func.func @transform_2(%arg0: i32) -> (i32, i32) {
    %c0_i32 = arith.constant 0 : i32
    %c0_i32_0 = arith.constant 0 : i32
    %c0_i32_1 = arith.constant 0 : i32
    return %c0_i32, %c0_i32_0 : i32, i32
  }
  func.func @transform_3(%arg0: i32) -> (i32, i32) {
    %c0_i32 = arith.constant 0 : i32
    %c0_i32_0 = arith.constant 0 : i32
    %c0_i32_1 = arith.constant 0 : i32
    return %c0_i32, %c0_i32_0 : i32, i32
  }
  func.func @transform_4(%arg0: i32) -> (i32, i32) {
    %c0_i32 = arith.constant 0 : i32
    %c0_i32_0 = arith.constant 0 : i32
    %c0_i32_1 = arith.constant 0 : i32
    return %c0_i32, %c0_i32_0 : i32, i32
  }
  func.func @transform_5(%arg0: i32) -> (i32, i32) {
    %c0_i32 = arith.constant 0 : i32
    %c0_i32_0 = arith.constant 0 : i32
    %c0_i32_1 = arith.constant 0 : i32
    return %c0_i32, %c0_i32_0 : i32, i32
  }
  func.func @transform_6(%arg0: i32) -> (i32, i32) {
    %c0_i32 = arith.constant 0 : i32
    %c0_i32_0 = arith.constant 0 : i32
    %c0_i32_1 = arith.constant 0 : i32
    return %c0_i32, %c0_i32_0 : i32, i32
  }
  func.func @transform_7(%arg0: i32) -> (i32, i32) {
    %c0_i32 = arith.constant 0 : i32
    %c0_i32_0 = arith.constant 0 : i32
    return %arg0, %c0_i32 : i32, i32
  }
}

</mosaic_0001>

<bundles_post_ra>
// kernel: tpu_custom_call.1
= control target key start
LH: loop header
LB: loop body
LE: loop exit
PB: predicated region body
PF: predicated region fallthrough
CT: control target
= control target key end

     0   :  { %12 = vsyncpa [#allocation3], 0  ;;  %s2076_s0 = inlined_call_operand.hbm [shape: f32[8,32], index: 0, kind: input, shape index: {}]   ;;  %s2077_s1 = inlined_call_operand.hbm [shape: bf16[32,256], index: 1, kind: input, shape index: {}]   ;;  %s2078_s2 = inlined_call_operand.vmem [shape: f32[1,256], index: 2, kind: input, shape index: {}]   ;;  %s2079_s3 = inlined_call_operand.hbm [shape: bf16[256,256], index: 3, kind: input, shape index: {}]   ;;  %s2080_s4 = inlined_call_operand.vmem [shape: f32[1,256], index: 4, kind: input, shape index: {}]   ;;  %s2081_s5 = inlined_call_operand.hbm [shape: bf16[256,128], index: 5, kind: input, shape index: {}]   ;;  %s2082_s6 = inlined_call_operand.vmem [shape: f32[1,128], index: 6, kind: input, shape index: {}]   ;;  %s2083_s7 = inlined_call_operand.vmem [shape: f32[8,4], index: 7, kind: output, shape index: {}]  }
   0x1   :  { %13 = vsyncpa [#allocation5], 0 }
   0x2   :  { %14 = vsyncpa [#allocation8], 0 }
   0x3   :  { %19 = vsyncadd [#allocation3], 3968  ;;  %s1727_s24 = smov [#allocation4]   ;;  %s1728_s26 = smov [#allocation2]  }
   0x4   :  { %s32_s25 = sshll.u32 %s1727_s24, 4  ;;  %s20_s27 = sshll.u32 %s1728_s26, 4  ;;  %s33_s25 = int_to_ptr.vmem [resolvable:$true] %s32_s25  ;;  %s1776_s27 = int_to_ptr.vmem [resolvable:$true] %s20_s27 }
   0x5   :  { %s1633_s30 = scalar_lea.hbm %s2077_s1, 512 }
   0x6   :  { %p1634_p0 = scmp.ne.s32.totalorder %s2077_s1, %s1633_s30  ;;  %p1637_p1 = scmp.lt.u32.totalorder %s1633_s30, %s2077_s1 }
   0x8   :  { %p1639_p2 = pnand %p1637_p1, %p1634_p0 }
   0xa   :  { %1642 = shalt.err (!%p1639_p2)
}
   0xb   :  { %s1643_s12 = scalar_lea.vmem %s33_s25, 512  ;;  %p1648_p4 = scmp.lt.s32.totalorder %s33_s25, %s33_s25 }
   0xc   :  { %p1644_p3 = scmp.ne.s32.totalorder %s33_s25, %s1643_s12  ;;  %p1649_p5 = scmp.lt.s32.totalorder %s1643_s12, %s1643_s12 }
   0xe   :  { %p1650_p6 = por %p1649_p5, %p1648_p4 }
  0x10   :  { %p1651_p7 = pnand %p1650_p6, %p1644_p3 }
  0x12   :  { %1654 = shalt.err (!%p1651_p7)
}
  0x13   :  { %s1729_s13 = smov 128   ;;  %s1730_s14 = smov 8  }
  0x14   :  { %38 = dma.hbm_to_vmem [thread:$0]  %s2077_s1, 512, %s33_s25, [#allocation5], %s1729_s13, %s1729_s13, %s1730_s14  }
  0x15   :  { %s1655_s19 = scalar_lea.hbm %s2076_s0, 128 }
  0x16   :  { %p1656_p8 = scmp.ne.s32.totalorder %s2076_s0, %s1655_s19  ;;  %p1659_p9 = scmp.lt.u32.totalorder %s1655_s19, %s2076_s0 }
  0x18   :  { %p1661_p10 = pnand %p1659_p9, %p1656_p8 }
  0x1a   :  { %1664 = shalt.err (!%p1661_p10)
}
  0x1b   :  { %s1665_s24 = scalar_lea.vmem %s1776_s27, 128  ;;  %s1669_s1 = scalar_lea.vmem %s1776_s27, 4096 }
  0x1c   :  { %p1666_p11 = scmp.ne.s32.totalorder %s1776_s27, %s1665_s24  ;;  %p1670_p12 = scmp.lt.s32.totalorder %s1776_s27, %s1776_s27 }
  0x1d   :  { %p1671_p13 = scmp.lt.s32.totalorder %s1669_s1, %s1665_s24 }
  0x1f   :  { %p1672_p0 = por %p1671_p13, %p1670_p12 }
  0x21   :  { %p1673_p1 = pnand %p1672_p0, %p1666_p11 }
  0x23   :  { %1676 = shalt.err (!%p1673_p1)
}
  0x24   :  { %26 = dma.hbm_to_vmem [thread:$0]  %s2076_s0, 128, %s1776_s27, [#allocation3], %s1729_s13, %s1729_s13, %s1730_s14  }
  0x25   :  { %s1731_s28 = smov [#allocation6]   ;;  %s1732_s30 = smov [#allocation7]  }
  0x26   :  { %s46_s29 = sshll.u32 %s1731_s28, 4  ;;  %s60_s8 = sshll.u32 %s1732_s30, 4  ;;  %s47_s29 = int_to_ptr.vmem [resolvable:$true] %s46_s29  ;;  %s1814_s8 = int_to_ptr.vmem [resolvable:$true] %s60_s8 }
  0x27   :  { %s1677_s11 = scalar_lea.hbm %s2079_s3, 4096 }
  0x28   :  { %p1678_p2 = scmp.ne.s32.totalorder %s2079_s3, %s1677_s11  ;;  %p1681_p3 = scmp.lt.u32.totalorder %s1677_s11, %s2079_s3 }
  0x2a   :  { %p1683_p4 = pnand %p1681_p3, %p1678_p2 }
  0x2c   :  { %1686 = shalt.err (!%p1683_p4)
}
  0x2d   :  { %s1687_s0 = scalar_lea.vmem %s47_s29, 4096  ;;  %p1692_p6 = scmp.lt.s32.totalorder %s47_s29, %s47_s29 }
  0x2e   :  { %p1688_p5 = scmp.ne.s32.totalorder %s47_s29, %s1687_s0  ;;  %p1693_p7 = scmp.lt.s32.totalorder %s1687_s0, %s1687_s0 }
  0x30   :  { %p1694_p8 = por %p1693_p7, %p1692_p6 }
  0x32   :  { %p1695_p9 = pnand %p1694_p8, %p1688_p5 }
  0x34   :  { %1698 = shalt.err (!%p1695_p9)
}
  0x35   :  { %52 = dma.hbm_to_vmem [thread:$0]  %s2079_s3, 4096, %s47_s29, [#allocation5], %s1729_s13, %s1729_s13, %s1730_s14  }
  0x36   :  { %s1699_s21 = scalar_lea.hbm %s2081_s5, 2048 }
  0x37   :  { %p1700_p10 = scmp.ne.s32.totalorder %s2081_s5, %s1699_s21  ;;  %p1703_p11 = scmp.lt.u32.totalorder %s1699_s21, %s2081_s5 }
  0x39   :  { %p1705_p12 = pnand %p1703_p11, %p1700_p10 }
  0x3b   :  { %1708 = shalt.err (!%p1705_p12)
}
  0x3c   :  { %s1709_s25 = scalar_lea.vmem %s1814_s8, 2048  ;;  %p1714_p0 = scmp.lt.s32.totalorder %s1814_s8, %s1814_s8 }
  0x3d   :  { %p1710_p13 = scmp.ne.s32.totalorder %s1814_s8, %s1709_s25  ;;  %p1715_p1 = scmp.lt.s32.totalorder %s1709_s25, %s1709_s25 }
  0x3f   :  { %p1716_p2 = por %p1715_p1, %p1714_p0 }
  0x41   :  { %p1717_p3 = pnand %p1716_p2, %p1710_p13 }
  0x43   :  { %1720 = shalt.err (!%p1717_p3)
}
  0x44   :  { %s1733_s3 = smov 64   ;;  %s1734_s13 = smov 4  }
  0x45   :  { %66 = dma.hbm_to_vmem [thread:$0]  %s2081_s5, 2048, %s1814_s8, [#allocation8], %s1733_s3, %s1733_s3, %s1734_s13  }
  0x46   :  { %1721 = dma.done.wait [#allocation3], 4096  }
  0x47   :  { %1722 = vsyncadd [#allocation3], 4294963200 }
  0x48   :  { %1723 = dma.done.wait [#allocation5], 4608  }
  0x49   :  { %1724 = vsyncadd [#allocation5], 4294962688 }
  0x4a   :  { %1725 = dma.done.wait [#allocation8], 2048  }
  0x4b   :  { %1726 = vsyncadd [#allocation8], 4294965248  ;;  %v1735_v0 = vmov 0   ;;  %v1563_v1 = vld [vmem:[#allocation4 + $0x4] ss:$8 sps:$4 sm:$0xff]   ;;  %vm166_vm0 = vcmask 261120  }
  0x4c   :  { %247 = vmatprep.mubr.bf16.mxu0 %v1735_v0  ;;  %327 = vmatprep.mubr.bf16.mxu1 %v1735_v0  ;;  %v1565_v2 = vld [vmem:[#allocation4] ss:$8 sps:$4 sm:$0xff]   ;;  %v1566_v3 = vld [vmem:[#allocation4 + $0x14] ss:$8 sps:$4 sm:$0xff]   ;;  %v1568_v4 = vld [vmem:[#allocation4 + $0x10] ss:$8 sps:$4 sm:$0xff]  }
  0x4d   :  { %215 = vmatprep.subr.bf16.mxu0 %v1563_v1  ;;  %1550 = vmatprep.subr.bf16.mxu1 %v1563_v1  ;;  %v82_v5 = vld [vmem:[#allocation2] sm:$0xff]  ;;  %v83_v6 = vld [vmem:[#allocation2 + $0x8] sm:$0xff]  ;;  %v84_v11 = vld [vmem:[#allocation2 + $0x10] sm:$0xff]  ;;  %vm1293_vm1 = vcmask 31744  }
  0x4e   :  { %216 = vmatpush1.bf16.msra.mxu0 %v1565_v2  ;;  %1552 = vmatpush1.bf16.msra.mxu1 %v1565_v2  ;;  %v114_v7 = vpack.c.bf16 %v83_v6, %v82_v5  ;;  %v98_v8 = vld [vmem:[#allocation2 + $0x80] sm:$0xff]  ;;  %v99_v9 = vld [vmem:[#allocation2 + $0x88] sm:$0xff]  ;;  %v85_v12 = vld [vmem:[#allocation2 + $0x18] sm:$0xff] }
  0x4f   :  { %217 = vmatprep.subr.bf16.mxu0 %v1566_v3  ;;  %1551 = vmatprep.subr.bf16.mxu1 %v1566_v3  ;;  %v122_v10 = vpack.c.bf16 %v99_v9, %v98_v8  ;;  %v100_v13 = vld [vmem:[#allocation2 + $0x90] sm:$0xff]  ;;  %v101_v14 = vld [vmem:[#allocation2 + $0x98] sm:$0xff]  ;;  %v115_v15 = vpack.c.bf16 %v85_v12, %v84_v11  ;;  %v1569_v16 = vld [vmem:[#allocation6] ss:$8 sps:$4 sm:$0xff]  }
  0x50   :  { %v1571_v17 = vld [vmem:[#allocation6 + $0x4] ss:$8 sps:$4 sm:$0xff]   ;;  %v123_v18 = vpack.c.bf16 %v101_v14, %v100_v13  ;;  %v1574_v19 = vld [vmem:[#allocation6 + $0x14] ss:$8 sps:$4 sm:$0xff]   ;;  %v1572_v20 = vld [vmem:[#allocation6 + $0x10] ss:$8 sps:$4 sm:$0xff]  }
  0x51   :  { %v86_v21 = vld [vmem:[#allocation2 + $0x20] sm:$0xff]  ;;  %v87_v23 = vld [vmem:[#allocation2 + $0x28] sm:$0xff]  ;;  %v1580_v28 = vld [vmem:[#allocation6 + $0x34] ss:$8 sps:$4 sm:$0xff]  }
  0x52   :  { %218 = vmatpush1.bf16.msra.mxu0 %v1568_v4  ;;  %1553 = vmatpush1.bf16.msra.mxu1 %v1568_v4  ;;  %v1577_v22 = vld [vmem:[#allocation6 + $0x24] ss:$8 sps:$4 sm:$0xff]   ;;  %v1575_v26 = vld [vmem:[#allocation6 + $0x20] ss:$8 sps:$4 sm:$0xff]   ;;  %v116_v27 = vpack.c.bf16 %v87_v23, %v86_v21  ;;  %v1578_v30 = vld [vmem:[#allocation6 + $0x30] ss:$8 sps:$4 sm:$0xff]   ;;  %v136_v21 = vlaneseq }
  0x53   :  { %708 = vmatprep.subr.bf16.mxu1 %v1571_v17  ;;  %v102_v24 = vld [vmem:[#allocation2 + $0xa0] sm:$0xff]  ;;  %v103_v25 = vld [vmem:[#allocation2 + $0xa8] sm:$0xff]  ;;  %v88_v31 = vld [vmem:[#allocation2 + $0x30] sm:$0xff] }
  0x54   :  { %v124_v29 = vpack.c.bf16 %v103_v25, %v102_v24  ;;  %v1583_v32 = vld [vmem:[#allocation6 + $0x44] ss:$8 sps:$4 sm:$0xff]   ;;  %v89_v33 = vld [vmem:[#allocation2 + $0x38] sm:$0xff]  ;;  %v104_v34 = vld [vmem:[#allocation2 + $0xb0] sm:$0xff] }
  0x55   :  { %1373 = vmatmul.mubr.msk.bf16.vlgmr.msra.gmra.mrb[0].mxu0 %vm166_vm0, %v114_v7  ;;  %1381 = vmatmul.mubr.msk.bf16.vlgmr.msra.gmra.mrb[0].mxu1 %vm166_vm0, %v122_v10  ;;  %v105_v35 = vld [vmem:[#allocation2 + $0xb8] sm:$0xff]  ;;  %v1581_v36 = vld [vmem:[#allocation6 + $0x40] ss:$8 sps:$4 sm:$0xff]   ;;  %v117_v37 = vpack.c.bf16 %v89_v33, %v88_v31  ;;  %v1589_v41 = vld [vmem:[#allocation6 + $0x64] ss:$8 sps:$4 sm:$0xff]  }
  0x56   :  { %257 = vmatprep.mubr.bf16.mxu0 %v1735_v0  ;;  %337 = vmatprep.mubr.bf16.mxu1 %v1735_v0  ;;  %v1586_v38 = vld [vmem:[#allocation6 + $0x54] ss:$8 sps:$4 sm:$0xff]   ;;  %v125_v39 = vpack.c.bf16 %v105_v35, %v104_v34  ;;  %v1584_v40 = vld [vmem:[#allocation6 + $0x50] ss:$8 sps:$4 sm:$0xff]   ;;  %v90_v42 = vld [vmem:[#allocation2 + $0x40] sm:$0xff] }
  0x57   :  { %709 = vmatpush1.bf16.msra.mxu1 %v1569_v16  ;;  %v91_v43 = vld [vmem:[#allocation2 + $0x48] sm:$0xff]  ;;  %v106_v44 = vld [vmem:[#allocation2 + $0xc0] sm:$0xff]  ;;  %v1592_v47 = vld [vmem:[#allocation6 + $0x74] ss:$8 sps:$4 sm:$0xff]  }
  0x58   :  { %710 = vmatprep.subr.bf16.mxu1 %v1574_v19  ;;  %v107_v45 = vld [vmem:[#allocation2 + $0xc8] sm:$0xff]  ;;  %v118_v48 = vpack.c.bf16 %v91_v43, %v90_v42  ;;  %v1590_v50 = vld [vmem:[#allocation6 + $0x70] ss:$8 sps:$4 sm:$0xff]   ;;  %v1598_v58 = vld [vmem:[#allocation6 + $0x94] ss:$8 sps:$4 sm:$0xff]  }
  0x59   :  { %v1587_v46 = vld [vmem:[#allocation6 + $0x60] ss:$8 sps:$4 sm:$0xff]   ;;  %v126_v49 = vpack.c.bf16 %v107_v45, %v106_v44  ;;  %v1595_v51 = vld [vmem:[#allocation6 + $0x84] ss:$8 sps:$4 sm:$0xff]   ;;  %v92_v52 = vld [vmem:[#allocation2 + $0x50] sm:$0xff] }
  0x5a   :  { %v93_v53 = vld [vmem:[#allocation2 + $0x58] sm:$0xff]  ;;  %v108_v54 = vld [vmem:[#allocation2 + $0xd0] sm:$0xff]  ;;  %v1593_v56 = vld [vmem:[#allocation6 + $0x80] ss:$8 sps:$4 sm:$0xff]  }
  0x5b   :  { %711 = vmatpush1.bf16.msra.mxu1 %v1572_v20  ;;  %v109_v55 = vld [vmem:[#allocation2 + $0xd8] sm:$0xff]  ;;  %v119_v57 = vpack.c.bf16 %v93_v53, %v92_v52  ;;  %v1601_v61 = vld [vmem:[#allocation6 + $0xa4] ss:$8 sps:$4 sm:$0xff]   ;;  %v1599_v3 = vld [vmem:[#allocation6 + $0xa0] ss:$8 sps:$4 sm:$0xff]  }
  0x5c   :  { %712 = vmatprep.subr.bf16.mxu1 %v1577_v22  ;;  %v127_v59 = vpack.c.bf16 %v109_v55, %v108_v54  ;;  %v1596_v60 = vld [vmem:[#allocation6 + $0x90] ss:$8 sps:$4 sm:$0xff]   ;;  %v94_v62 = vld [vmem:[#allocation2 + $0x60] sm:$0xff]  ;;  %v95_v63 = vld [vmem:[#allocation2 + $0x68] sm:$0xff]  ;;  %v1880_v22 = vshrl.u32 %v136_v21, 7 }
  0x5d   :  { %1374 = vmatmul.mubr.msk.bf16.gmra.mrb[4].mxu0 %vm166_vm0, %v115_v15  ;;  %1382 = vmatmul.mubr.msk.bf16.gmra.mrb[4].mxu1 %vm166_vm0, %v123_v18  ;;  %v110_v1 = vld [vmem:[#allocation2 + $0xe0] sm:$0xff]  ;;  %v111_v2 = vld [vmem:[#allocation2 + $0xe8] sm:$0xff]  ;;  %v120_v4 = vpack.c.bf16 %v95_v63, %v94_v62  ;;  %v1604_v5 = vld [vmem:[#allocation6 + $0xb4] ss:$8 sps:$4 sm:$0xff]  }
  0x5e   :  { %267 = vmatprep.mubr.bf16.mxu0 %v1735_v0  ;;  %347 = vmatprep.mubr.bf16.mxu1 %v1735_v0  ;;  %v128_v6 = vpack.c.bf16 %v111_v2, %v110_v1  ;;  %v1602_v7 = vld [vmem:[#allocation6 + $0xb0] ss:$8 sps:$4 sm:$0xff]   ;;  %v1607_v8 = vld [vmem:[#allocation6 + $0xc4] ss:$8 sps:$4 sm:$0xff]   ;;  %v1605_v13 = vld [vmem:[#allocation6 + $0xc0] ss:$8 sps:$4 sm:$0xff]  }
  0x5f   :  { %713 = vmatpush1.bf16.msra.mxu1 %v1575_v26  ;;  %v96_v9 = vld [vmem:[#allocation2 + $0x70] sm:$0xff]  ;;  %v97_v10 = vld [vmem:[#allocation2 + $0x78] sm:$0xff]  ;;  %v1613_v18 = vld [vmem:[#allocation6 + $0xe4] ss:$8 sps:$4 sm:$0xff]   ;;  %v138_v23 = vsub.s32 0, %v1880_v22  ;;  %v142_v25 = vsub.s32 1, %v1880_v22 }
  0x60   :  { %714 = vmatprep.subr.bf16.mxu1 %v1580_v28  ;;  %v112_v11 = vld [vmem:[#allocation2 + $0xf0] sm:$0xff]  ;;  %v113_v12 = vld [vmem:[#allocation2 + $0xf8] sm:$0xff]  ;;  %v121_v14 = vpack.c.bf16 %v97_v10, %v96_v9  ;;  %v1611_v19 = vld [vmem:[#allocation6 + $0xe0] ss:$8 sps:$4 sm:$0xff]  }
  0x61   :  { %v1610_v15 = vld [vmem:[#allocation6 + $0xd4] ss:$8 sps:$4 sm:$0xff]   ;;  %v129_v16 = vpack.c.bf16 %v113_v12, %v112_v11  ;;  %v1608_v17 = vld [vmem:[#allocation6 + $0xd0] ss:$8 sps:$4 sm:$0xff]   ;;  %v134_v24 = vld [vmem:[%s2078_s2] sm:$0x3] }
  0x62   :  { %v1614_v20 = vld [vmem:[#allocation6 + $0xf0] ss:$8 sps:$4 sm:$0xff]   ;;  %v1889_v26 = vrot.slane %v134_v24, %v138_v23  ;;  %v1619_v42 = vld [vmem:[#allocation7 + $0x48] sm:$0xff]  }
  0x63   :  { %715 = vmatpush1.bf16.msra.mxu1 %v1578_v30  ;;  %v1620_v54 = vld [vmem:[#allocation7 + $0x8] sm:$0xff]   ;;  %v1623_v11 = vld [vmem:[#allocation7 + $0x58] sm:$0xff]  }
  0x64   :  { %716 = vmatprep.subr.bf16.mxu1 %v1583_v32 }
  0x65   :  { %1375 = vmatmul.mubr.msk.bf16.gmra.mrb[8].mxu0 %vm166_vm0, %v116_v27  ;;  %1383 = vmatmul.mubr.msk.bf16.gmra.mrb[8].mxu1 %vm166_vm0, %v124_v29  ;;  %v1893_v27 = vrot.slane %v134_v24, %v142_v25  ;;  %v1624_v24 = vld [vmem:[#allocation7 + $0x18] sm:$0xff]  }
  0x66   :  { %277 = vmatprep.mubr.bf16.mxu0 %v1735_v0  ;;  %357 = vmatprep.mubr.bf16.mxu1 %v1735_v0 }
  0x67   :  { %717 = vmatpush1.bf16.msra.mxu1 %v1581_v36 }
  0x68   :  { %718 = vmatprep.subr.bf16.mxu1 %v1586_v38 }
  0x6b   :  { %719 = vmatpush1.bf16.msra.mxu1 %v1584_v40  ;;  %v1617_v40 = vld [vmem:[#allocation7 + $0x40] sm:$0xff]  }
  0x6c   :  { %720 = vmatprep.subr.bf16.mxu1 %v1589_v41  ;;  %v1618_v41 = vld [vmem:[#allocation7] sm:$0xff]   ;;  %1438 = vmatprep.subr.bf16.mxu0 %v1617_v40 }
  0x6d   :  { %1376 = vmatmul.mubr.msk.bf16.gmra.mrb[12].mxu0 %vm166_vm0, %v117_v37  ;;  %1384 = vmatmul.mubr.msk.bf16.gmra.mrb[12].mxu1 %vm166_vm0, %v125_v39 }
  0x6e   :  { %287 = vmatprep.mubr.bf16.mxu0 %v1735_v0  ;;  %367 = vmatprep.mubr.bf16.mxu1 %v1735_v0 }
  0x6f   :  { %721 = vmatpush1.bf16.msra.mxu1 %v1587_v46  ;;  %1439 = vmatpush3.bf16.msra.mxu0 %v1618_v41 }
  0x70   :  { %722 = vmatprep.subr.bf16.mxu1 %v1592_v47  ;;  %1440 = vmatprep.subr.bf16.mxu0 %v1619_v42  ;;  %v1626_v42 = vld [vmem:[#allocation7 + $0x20] sm:$0xff]  }
  0x73   :  { %723 = vmatpush1.bf16.msra.mxu1 %v1590_v50  ;;  %1441 = vmatpush3.bf16.msra.mxu0 %v1620_v54 }
  0x74   :  { %724 = vmatprep.subr.bf16.mxu1 %v1595_v51 }
  0x75   :  { %1377 = vmatmul.mubr.msk.bf16.gmra.mrb[16].mxu0 %vm166_vm0, %v118_v48  ;;  %1385 = vmatmul.mubr.msk.bf16.gmra.mrb[16].mxu1 %vm166_vm0, %v126_v49 }
  0x76   :  { %297 = vmatprep.mubr.bf16.mxu0 %v1735_v0  ;;  %377 = vmatprep.mubr.bf16.mxu1 %v1735_v0 }
  0x77   :  { %725 = vmatpush1.bf16.msra.mxu1 %v1593_v56 }
  0x78   :  { %726 = vmatprep.subr.bf16.mxu1 %v1598_v58 }
  0x7b   :  { %727 = vmatpush1.bf16.msra.mxu1 %v1596_v60 }
  0x7c   :  { %728 = vmatprep.subr.bf16.mxu1 %v1601_v61 }
  0x7d   :  { %1378 = vmatmul.mubr.msk.bf16.gmra.mrb[20].mxu0 %vm166_vm0, %v119_v57  ;;  %1386 = vmatmul.mubr.msk.bf16.gmra.mrb[20].mxu1 %vm166_vm0, %v127_v59  ;;  %v1621_v57 = vld [vmem:[#allocation7 + $0x50] sm:$0xff]  }
  0x7e   :  { %307 = vmatprep.mubr.bf16.mxu0 %v1735_v0  ;;  %387 = vmatprep.mubr.bf16.mxu1 %v1735_v0 }
  0x7f   :  { %729 = vmatpush1.bf16.msra.mxu1 %v1599_v3  ;;  %1442 = vmatprep.subr.bf16.mxu0 %v1621_v57 }
  0x80   :  { %730 = vmatprep.subr.bf16.mxu1 %v1604_v5 }
  0x83   :  { %731 = vmatpush1.bf16.msra.mxu1 %v1602_v7 }
  0x84   :  { %732 = vmatprep.subr.bf16.mxu1 %v1607_v8 }
  0x85   :  { %1379 = vmatmul.mubr.msk.bf16.gmra.mrb[24].mxu0 %vm166_vm0, %v120_v4  ;;  %1387 = vmatmul.mubr.msk.bf16.gmra.mrb[24].mxu1 %vm166_vm0, %v128_v6  ;;  %v1622_v6 = vld [vmem:[#allocation7 + $0x10] sm:$0xff]  }
  0x86   :  { %317 = vmatprep.mubr.bf16.mxu0 %v1735_v0  ;;  %397 = vmatprep.mubr.bf16.mxu1 %v1735_v0  ;;  %v1616_v0 = vld [vmem:[#allocation6 + $0xf4] ss:$8 sps:$4 sm:$0xff]  }
  0x87   :  { %733 = vmatpush1.bf16.msra.mxu1 %v1605_v13  ;;  %1443 = vmatpush3.bf16.msra.mxu0 %v1622_v6 }
  0x88   :  { %734 = vmatprep.subr.bf16.mxu1 %v1610_v15  ;;  %1444 = vmatprep.subr.bf16.mxu0 %v1623_v11 }
  0x8b   :  { %735 = vmatpush1.bf16.msra.mxu1 %v1608_v17  ;;  %1445 = vmatpush3.bf16.msra.mxu0 %v1624_v24 }
  0x8c   :  { %736 = vmatprep.subr.bf16.mxu1 %v1613_v18 }
  0x8d   :  { %1380 = vmatmul.mubr.msk.bf16.gmra.mrb[28].mxu0 %vm166_vm0, %v121_v14  ;;  %1388 = vmatmul.mubr.msk.bf16.gmra.mrb[28].mxu1 %vm166_vm0, %v129_v16 }
  0x8f   :  { %737 = vmatpush1.bf16.msra.mxu1 %v1611_v19 }
  0x90   :  { %738 = vmatprep.subr.bf16.mxu1 %v1616_v0 }
  0x93   :  { %739 = vmatpush1.bf16.msra.mxu1 %v1614_v20 }
 0x128   :  { %v249_v28 = vpop.f32.mrb[0].mxu0  ;;  %v329_v31 = vpop.f32.mrb[0].mxu1 }
 0x129   :  { %v250_v29 = vadd.f32 %v249_v28, %v1889_v26  ;;  %v251_v30 = vpop.f32.mrb[1].mxu0  ;;  %v330_v34 = vadd.f32 %v329_v31, %v1889_v26  ;;  %v331_v35 = vpop.f32.mrb[1].mxu1 }
 0x12a   :  { %v252_v32 = vadd.f32 %v251_v30, %v1893_v27  ;;  %v253_v33 = vpop.f32.mrb[2].mxu0  ;;  %v332_v38 = vadd.f32 %v331_v35, %v1893_v27  ;;  %v333_v39 = vpop.f32.mrb[2].mxu1  ;;  %v1625_v30 = vld [vmem:[#allocation7 + $0x60] sm:$0xff]  }
 0x12b   :  { %v254_v36 = vadd.f32 %v253_v33, %v1889_v26  ;;  %v255_v37 = vpop.f32.mrb[3].mxu0  ;;  %v440_v44 = vmax.f32 %v330_v34, 0.0  ;;  %v334_v45 = vadd.f32 %v333_v39, %v1889_v26  ;;  %v335_v46 = vpop.f32.mrb[3].mxu1  ;;  %v408_v47 = vmax.f32 %v250_v29, 0.0  ;;  %1446 = vmatprep.subr.bf16.mxu0 %v1625_v30 }
 0x12c   :  { %v256_v43 = vadd.f32 %v255_v37, %v1893_v27  ;;  %v441_v49 = vmax.f32 %v332_v38, 0.0  ;;  %v336_v50 = vadd.f32 %v335_v46, %v1893_v27  ;;  %v409_v51 = vmax.f32 %v252_v32, 0.0  ;;  %1447 = vmatpush3.bf16.msra.mxu0 %v1626_v42 }
 0x12d   :  { %v410_v48 = vmax.f32 %v254_v36, 0.0  ;;  %v442_v53 = vmax.f32 %v334_v45, 0.0 }
 0x12e   :  { %v411_v52 = vmax.f32 %v256_v43, 0.0  ;;  %v443_v56 = vmax.f32 %v336_v50, 0.0 }
 0x12f   :  { %v472_v55 = vpack.c.bf16 %v410_v48, %v408_v47  ;;  %v1903_v60 = vpack.c.bf16 %v442_v53, %v440_v44  ;;  %v1627_v47 = vld [vmem:[#allocation7 + $0x68] sm:$0xff]  }
 0x130   :  { %v473_v58 = vpack.c.bf16 %v411_v52, %v409_v51  ;;  %v259_v59 = vpop.f32.mrb[4].mxu0  ;;  %v1906_v63 = vpack.c.bf16 %v443_v56, %v441_v49  ;;  %v339_v1 = vpop.f32.mrb[4].mxu1  ;;  %1448 = vmatprep.subr.bf16.mxu0 %v1627_v47 }
 0x131   :  { %v260_v61 = vadd.f32 %v259_v59, %v1889_v26  ;;  %v261_v62 = vpop.f32.mrb[5].mxu0  ;;  %v340_v4 = vadd.f32 %v339_v1, %v1889_v26  ;;  %v341_v5 = vpop.f32.mrb[5].mxu1  ;;  %v1628_v59 = vld [vmem:[#allocation7 + $0x28] sm:$0xff]   ;;  %v1629_v1 = vld [vmem:[#allocation7 + $0x70] sm:$0xff]  }
 0x132   :  { %v262_v2 = vadd.f32 %v261_v62, %v1893_v27  ;;  %v263_v3 = vpop.f32.mrb[6].mxu0  ;;  %740 = vmatprep.mubr.bf16.mxu1 %v473_v58  ;;  %v342_v9 = vadd.f32 %v341_v5, %v1893_v27  ;;  %v343_v10 = vpop.f32.mrb[6].mxu1  ;;  %1449 = vmatpush3.bf16.msra.mxu0 %v1628_v59 }
 0x133   :  { %v264_v7 = vadd.f32 %v263_v3, %v1889_v26  ;;  %v265_v8 = vpop.f32.mrb[7].mxu0  ;;  %741 = vmatmul.mubr.bf16.vlgmr.msra.gmra.mrb[32].mxu1 %v472_v55  ;;  %v444_v13 = vmax.f32 %v340_v4, 0.0  ;;  %v344_v14 = vadd.f32 %v343_v10, %v1889_v26  ;;  %v345_v15 = vpop.f32.mrb[7].mxu1  ;;  %v412_v16 = vmax.f32 %v260_v61, 0.0  ;;  %1450 = vmatprep.subr.bf16.mxu0 %v1629_v1 }
 0x134   :  { %v266_v12 = vadd.f32 %v265_v8, %v1893_v27  ;;  %v445_v18 = vmax.f32 %v342_v9, 0.0  ;;  %v346_v19 = vadd.f32 %v345_v15, %v1893_v27  ;;  %v413_v0 = vmax.f32 %v262_v2, 0.0 }
 0x135   :  { %v414_v17 = vmax.f32 %v264_v7, 0.0  ;;  %v446_v21 = vmax.f32 %v344_v14, 0.0 }
 0x136   :  { %v415_v20 = vmax.f32 %v266_v12, 0.0  ;;  %v447_v29 = vmax.f32 %v346_v19, 0.0 }
 0x137   :  { %v474_v28 = vpack.c.bf16 %v414_v17, %v412_v16  ;;  %v1915_v33 = vpack.c.bf16 %v446_v21, %v444_v13  ;;  %v1630_v13 = vld [vmem:[#allocation7 + $0x30] sm:$0xff]  }
 0x138   :  { %v475_v31 = vpack.c.bf16 %v415_v20, %v413_v0  ;;  %v269_v32 = vpop.f32.mrb[8].mxu0  ;;  %v1918_v36 = vpack.c.bf16 %v447_v29, %v445_v18  ;;  %v349_v37 = vpop.f32.mrb[8].mxu1  ;;  %1451 = vmatpush3.bf16.msra.mxu0 %v1630_v13 }
 0x139   :  { %v270_v34 = vadd.f32 %v269_v32, %v1889_v26  ;;  %v271_v35 = vpop.f32.mrb[9].mxu0  ;;  %v350_v40 = vadd.f32 %v349_v37, %v1889_v26  ;;  %v351_v41 = vpop.f32.mrb[9].mxu1 }
 0x13a   :  { %v272_v38 = vadd.f32 %v271_v35, %v1893_v27  ;;  %v273_v39 = vpop.f32.mrb[10].mxu0  ;;  %750 = vmatprep.mubr.bf16.mxu1 %v475_v31  ;;  %v352_v45 = vadd.f32 %v351_v41, %v1893_v27  ;;  %v353_v46 = vpop.f32.mrb[10].mxu1 }
 0x13b   :  { %v274_v43 = vadd.f32 %v273_v39, %v1889_v26  ;;  %v275_v44 = vpop.f32.mrb[11].mxu0  ;;  %751 = vmatmul.mubr.bf16.gmra.mrb[36].mxu1 %v474_v28  ;;  %v448_v49 = vmax.f32 %v350_v40, 0.0  ;;  %v354_v50 = vadd.f32 %v353_v46, %v1889_v26  ;;  %v355_v51 = vpop.f32.mrb[11].mxu1  ;;  %v416_v52 = vmax.f32 %v270_v34, 0.0 }
 0x13c   :  { %v276_v48 = vadd.f32 %v275_v44, %v1893_v27  ;;  %v449_v54 = vmax.f32 %v352_v45, 0.0  ;;  %v356_v55 = vadd.f32 %v355_v51, %v1893_v27  ;;  %v417_v56 = vmax.f32 %v272_v38, 0.0 }
 0x13d   :  { %v418_v53 = vmax.f32 %v274_v43, 0.0  ;;  %v450_v58 = vmax.f32 %v354_v50, 0.0 }
 0x13e   :  { %v419_v57 = vmax.f32 %v276_v48, 0.0  ;;  %v451_v62 = vmax.f32 %v356_v55, 0.0 }
 0x13f   :  { %v476_v61 = vpack.c.bf16 %v418_v53, %v416_v52  ;;  %v1927_v4 = vpack.c.bf16 %v450_v58, %v448_v49 }
 0x140   :  { %v477_v2 = vpack.c.bf16 %v419_v57, %v417_v56  ;;  %v279_v3 = vpop.f32.mrb[12].mxu0  ;;  %v1930_v7 = vpack.c.bf16 %v451_v62, %v449_v54  ;;  %v359_v8 = vpop.f32.mrb[12].mxu1 }
 0x141   :  { %v280_v5 = vadd.f32 %v279_v3, %v1889_v26  ;;  %v281_v6 = vpop.f32.mrb[13].mxu0  ;;  %v360_v11 = vadd.f32 %v359_v8, %v1889_v26  ;;  %v361_v12 = vpop.f32.mrb[13].mxu1 }
 0x142   :  { %v282_v9 = vadd.f32 %v281_v6, %v1893_v27  ;;  %v283_v10 = vpop.f32.mrb[14].mxu0  ;;  %760 = vmatprep.mubr.bf16.mxu1 %v477_v2  ;;  %v362_v16 = vadd.f32 %v361_v12, %v1893_v27  ;;  %v363_v17 = vpop.f32.mrb[14].mxu1 }
 0x143   :  { %v284_v14 = vadd.f32 %v283_v10, %v1889_v26  ;;  %v285_v15 = vpop.f32.mrb[15].mxu0  ;;  %761 = vmatmul.mubr.bf16.gmra.mrb[40].mxu1 %v476_v61  ;;  %v452_v19 = vmax.f32 %v360_v11, 0.0  ;;  %v364_v0 = vadd.f32 %v363_v17, %v1889_v26  ;;  %v365_v20 = vpop.f32.mrb[15].mxu1  ;;  %v420_v21 = vmax.f32 %v280_v5, 0.0 }
 0x144   :  { %v286_v18 = vadd.f32 %v285_v15, %v1893_v27  ;;  %v453_v28 = vmax.f32 %v362_v16, 0.0  ;;  %v366_v29 = vadd.f32 %v365_v20, %v1893_v27  ;;  %v421_v30 = vmax.f32 %v282_v9, 0.0 }
 0x145   :  { %v422_v24 = vmax.f32 %v284_v14, 0.0  ;;  %v454_v32 = vmax.f32 %v364_v0, 0.0 }
 0x146   :  { %v423_v31 = vmax.f32 %v286_v18, 0.0  ;;  %v455_v35 = vmax.f32 %v366_v29, 0.0 }
 0x147   :  { %v478_v34 = vpack.c.bf16 %v422_v24, %v420_v21  ;;  %v1939_v39 = vpack.c.bf16 %v454_v32, %v452_v19 }
 0x148   :  { %v479_v37 = vpack.c.bf16 %v423_v31, %v421_v30  ;;  %v289_v38 = vpop.f32.mrb[16].mxu0  ;;  %v1942_v42 = vpack.c.bf16 %v455_v35, %v453_v28  ;;  %v369_v43 = vpop.f32.mrb[16].mxu1 }
 0x149   :  { %v290_v40 = vadd.f32 %v289_v38, %v1889_v26  ;;  %v291_v41 = vpop.f32.mrb[17].mxu0  ;;  %v370_v46 = vadd.f32 %v369_v43, %v1889_v26  ;;  %v371_v47 = vpop.f32.mrb[17].mxu1 }
 0x14a   :  { %v292_v44 = vadd.f32 %v291_v41, %v1893_v27  ;;  %v293_v45 = vpop.f32.mrb[18].mxu0  ;;  %770 = vmatprep.mubr.bf16.mxu1 %v479_v37  ;;  %v372_v50 = vadd.f32 %v371_v47, %v1893_v27  ;;  %v373_v51 = vpop.f32.mrb[18].mxu1 }
 0x14b   :  { %v294_v48 = vadd.f32 %v293_v45, %v1889_v26  ;;  %v295_v49 = vpop.f32.mrb[19].mxu0  ;;  %771 = vmatmul.mubr.bf16.gmra.mrb[44].mxu1 %v478_v34  ;;  %v456_v53 = vmax.f32 %v370_v46, 0.0  ;;  %v374_v54 = vadd.f32 %v373_v51, %v1889_v26  ;;  %v375_v55 = vpop.f32.mrb[19].mxu1  ;;  %v424_v56 = vmax.f32 %v290_v40, 0.0 }
 0x14c   :  { %v296_v52 = vadd.f32 %v295_v49, %v1893_v27  ;;  %v457_v58 = vmax.f32 %v372_v50, 0.0  ;;  %v376_v59 = vadd.f32 %v375_v55, %v1893_v27  ;;  %v425_v61 = vmax.f32 %v292_v44, 0.0 }
 0x14d   :  { %v426_v57 = vmax.f32 %v294_v48, 0.0  ;;  %v458_v1 = vmax.f32 %v374_v54, 0.0 }
 0x14e   :  { %v427_v62 = vmax.f32 %v296_v52, 0.0  ;;  %v459_v3 = vmax.f32 %v376_v59, 0.0 }
 0x14f   :  { %v480_v2 = vpack.c.bf16 %v426_v57, %v424_v56  ;;  %v1951_v8 = vpack.c.bf16 %v458_v1, %v456_v53 }
 0x150   :  { %v481_v5 = vpack.c.bf16 %v427_v62, %v425_v61  ;;  %v299_v6 = vpop.f32.mrb[20].mxu0  ;;  %v1954_v11 = vpack.c.bf16 %v459_v3, %v457_v58  ;;  %v379_v12 = vpop.f32.mrb[20].mxu1 }
 0x151   :  { %v300_v9 = vadd.f32 %v299_v6, %v1889_v26  ;;  %v301_v10 = vpop.f32.mrb[21].mxu0  ;;  %v380_v15 = vadd.f32 %v379_v12, %v1889_v26  ;;  %v381_v16 = vpop.f32.mrb[21].mxu1 }
 0x152   :  { %v302_v13 = vadd.f32 %v301_v10, %v1893_v27  ;;  %v303_v14 = vpop.f32.mrb[22].mxu0  ;;  %780 = vmatprep.mubr.bf16.mxu1 %v481_v5  ;;  %v382_v19 = vadd.f32 %v381_v16, %v1893_v27  ;;  %v383_v0 = vpop.f32.mrb[22].mxu1 }
 0x153   :  { %v304_v17 = vadd.f32 %v303_v14, %v1889_v26  ;;  %v305_v18 = vpop.f32.mrb[23].mxu0  ;;  %781 = vmatmul.mubr.bf16.gmra.mrb[48].mxu1 %v480_v2  ;;  %v460_v21 = vmax.f32 %v380_v15, 0.0  ;;  %v384_v24 = vadd.f32 %v383_v0, %v1889_v26  ;;  %v385_v28 = vpop.f32.mrb[23].mxu1  ;;  %v428_v29 = vmax.f32 %v300_v9, 0.0 }
 0x154   :  { %v306_v20 = vadd.f32 %v305_v18, %v1893_v27  ;;  %v461_v31 = vmax.f32 %v382_v19, 0.0  ;;  %v386_v32 = vadd.f32 %v385_v28, %v1893_v27  ;;  %v429_v34 = vmax.f32 %v302_v13, 0.0 }
 0x155   :  { %v430_v30 = vmax.f32 %v304_v17, 0.0  ;;  %v462_v37 = vmax.f32 %v384_v24, 0.0 }
 0x156   :  { %v431_v35 = vmax.f32 %v306_v20, 0.0  ;;  %v463_v40 = vmax.f32 %v386_v32, 0.0 }
 0x157   :  { %v482_v38 = vpack.c.bf16 %v430_v30, %v428_v29  ;;  %v1963_v44 = vpack.c.bf16 %v462_v37, %v460_v21 }
 0x158   :  { %v483_v41 = vpack.c.bf16 %v431_v35, %v429_v34  ;;  %v309_v43 = vpop.f32.mrb[24].mxu0  ;;  %v1966_v47 = vpack.c.bf16 %v463_v40, %v461_v31  ;;  %v389_v48 = vpop.f32.mrb[24].mxu1 }
 0x159   :  { %v310_v45 = vadd.f32 %v309_v43, %v1889_v26  ;;  %v311_v46 = vpop.f32.mrb[25].mxu0  ;;  %v390_v51 = vadd.f32 %v389_v48, %v1889_v26  ;;  %v391_v52 = vpop.f32.mrb[25].mxu1 }
 0x15a   :  { %v312_v49 = vadd.f32 %v311_v46, %v1893_v27  ;;  %v313_v50 = vpop.f32.mrb[26].mxu0  ;;  %790 = vmatprep.mubr.bf16.mxu1 %v483_v41  ;;  %v392_v55 = vadd.f32 %v391_v52, %v1893_v27  ;;  %v393_v56 = vpop.f32.mrb[26].mxu1 }
 0x15b   :  { %v314_v53 = vadd.f32 %v313_v50, %v1889_v26  ;;  %v315_v54 = vpop.f32.mrb[27].mxu0  ;;  %791 = vmatmul.mubr.bf16.gmra.mrb[52].mxu1 %v482_v38  ;;  %v464_v58 = vmax.f32 %v390_v51, 0.0  ;;  %v394_v59 = vadd.f32 %v393_v56, %v1889_v26  ;;  %v395_v61 = vpop.f32.mrb[27].mxu1  ;;  %v432_v62 = vmax.f32 %v310_v45, 0.0 }
 0x15c   :  { %v316_v57 = vadd.f32 %v315_v54, %v1893_v27  ;;  %v465_v2 = vmax.f32 %v392_v55, 0.0  ;;  %v396_v3 = vadd.f32 %v395_v61, %v1893_v27  ;;  %v433_v5 = vmax.f32 %v312_v49, 0.0 }
 0x15d   :  { %v434_v1 = vmax.f32 %v314_v53, 0.0  ;;  %v466_v9 = vmax.f32 %v394_v59, 0.0 }
 0x15e   :  { %v435_v6 = vmax.f32 %v316_v57, 0.0  ;;  %v467_v12 = vmax.f32 %v396_v3, 0.0 }
 0x15f   :  { %v484_v10 = vpack.c.bf16 %v434_v1, %v432_v62  ;;  %v500_v15 = vpack.c.bf16 %v466_v9, %v464_v58 }
 0x160   :  { %v485_v13 = vpack.c.bf16 %v435_v6, %v433_v5  ;;  %v319_v14 = vpop.f32.mrb[28].mxu0  ;;  %v501_v18 = vpack.c.bf16 %v467_v12, %v465_v2  ;;  %v399_v19 = vpop.f32.mrb[28].mxu1 }
 0x161   :  { %v320_v16 = vadd.f32 %v319_v14, %v1889_v26  ;;  %v321_v17 = vpop.f32.mrb[29].mxu0  ;;  %v400_v21 = vadd.f32 %v399_v19, %v1889_v26  ;;  %v401_v24 = vpop.f32.mrb[29].mxu1 }
 0x162   :  { %v322_v0 = vadd.f32 %v321_v17, %v1893_v27  ;;  %v323_v20 = vpop.f32.mrb[30].mxu0  ;;  %800 = vmatprep.mubr.bf16.mxu1 %v485_v13  ;;  %v402_v30 = vadd.f32 %v401_v24, %v1893_v27  ;;  %v403_v31 = vpop.f32.mrb[30].mxu1 }
 0x163   :  { %v324_v28 = vadd.f32 %v323_v20, %v1889_v26  ;;  %v325_v29 = vpop.f32.mrb[31].mxu0  ;;  %801 = vmatmul.mubr.bf16.gmra.mrb[56].mxu1 %v484_v10  ;;  %v468_v34 = vmax.f32 %v400_v21, 0.0  ;;  %v404_v35 = vadd.f32 %v403_v31, %v1889_v26  ;;  %v405_v37 = vpop.f32.mrb[31].mxu1  ;;  %v436_v38 = vmax.f32 %v320_v16, 0.0  ;;  %v1631_v26 = vld [vmem:[#allocation7 + $0x78] sm:$0xff]  }
 0x164   :  { %v326_v32 = vadd.f32 %v325_v29, %v1893_v27  ;;  %v469_v41 = vmax.f32 %v402_v30, 0.0  ;;  %v406_v43 = vadd.f32 %v405_v37, %v1893_v27  ;;  %v437_v45 = vmax.f32 %v322_v0, 0.0  ;;  %v1632_v27 = vld [vmem:[#allocation7 + $0x38] sm:$0xff]   ;;  %1452 = vmatprep.subr.bf16.mxu0 %v1631_v26 }
 0x165   :  { %v438_v40 = vmax.f32 %v324_v28, 0.0  ;;  %v470_v48 = vmax.f32 %v404_v35, 0.0  ;;  %1453 = vmatpush3.bf16.msra.mxu0 %v1632_v27 }
 0x166   :  { %v439_v46 = vmax.f32 %v326_v32, 0.0  ;;  %v471_v50 = vmax.f32 %v406_v43, 0.0 }
 0x167   :  { %v486_v49 = vpack.c.bf16 %v438_v40, %v436_v38  ;;  %v502_v52 = vpack.c.bf16 %v470_v48, %v468_v34 }
 0x168   :  { %v487_v51 = vpack.c.bf16 %v439_v46, %v437_v45  ;;  %v503_v53 = vpack.c.bf16 %v471_v50, %v469_v41 }
 0x16a   :  { %810 = vmatprep.mubr.bf16.mxu1 %v487_v51 }
 0x16b   :  { %811 = vmatmul.mubr.bf16.gmra.mrb[60].mxu1 %v486_v49 }
 0x16c   :  { %820 = vmatprep.mubr.bf16.mxu1 %v1906_v63 }
 0x173   :  { %821 = vmatmul.mubr.bf16.gmra.mrb[64].mxu1 %v1903_v60  ;;  %v536_v60 = vld [vmem:[%s2080_s4] sm:$0x3] }
 0x174   :  { %830 = vmatprep.mubr.bf16.mxu1 %v1918_v36  ;;  %v2000_v63 = vrot.slane %v536_v60, %v138_v23 }
 0x17b   :  { %831 = vmatmul.mubr.bf16.gmra.mrb[68].mxu1 %v1915_v33  ;;  %v2004_v33 = vrot.slane %v536_v60, %v142_v25 }
 0x17c   :  { %840 = vmatprep.mubr.bf16.mxu1 %v1930_v7 }
 0x183   :  { %841 = vmatmul.mubr.bf16.gmra.mrb[72].mxu1 %v1927_v4 }
 0x184   :  { %850 = vmatprep.mubr.bf16.mxu1 %v1942_v42 }
 0x18b   :  { %851 = vmatmul.mubr.bf16.gmra.mrb[76].mxu1 %v1939_v39 }
 0x18c   :  { %860 = vmatprep.mubr.bf16.mxu1 %v1954_v11 }
 0x193   :  { %861 = vmatmul.mubr.bf16.gmra.mrb[80].mxu1 %v1951_v8 }
 0x194   :  { %870 = vmatprep.mubr.bf16.mxu1 %v1966_v47 }
 0x19b   :  { %871 = vmatmul.mubr.bf16.gmra.mrb[84].mxu1 %v1963_v44 }
 0x19c   :  { %880 = vmatprep.mubr.bf16.mxu1 %v501_v18 }
 0x1a3   :  { %881 = vmatmul.mubr.bf16.gmra.mrb[88].mxu1 %v500_v15 }
 0x1a4   :  { %890 = vmatprep.mubr.bf16.mxu1 %v503_v53 }
 0x1ab   :  { %891 = vmatmul.mubr.bf16.gmra.mrb[92].mxu1 %v502_v52 }
 0x206   :  { %v742_v36 = vpop.f32.mrb[32].mxu1 }
 0x207   :  { %v743_v4 = vadd.f32 %v742_v36, %v2000_v63  ;;  %v744_v7 = vpop.f32.mrb[33].mxu1 }
 0x208   :  { %v745_v39 = vadd.f32 %v744_v7, %v2004_v33  ;;  %v746_v42 = vpop.f32.mrb[34].mxu1 }
 0x209   :  { %v747_v8 = vadd.f32 %v746_v42, %v2000_v63  ;;  %v748_v11 = vpop.f32.mrb[35].mxu1  ;;  %v901_v47 = vmax.f32 %v743_v4, 0.0 }
 0x20a   :  { %v749_v44 = vadd.f32 %v748_v11, %v2004_v33  ;;  %v902_v23 = vmax.f32 %v745_v39, 0.0 }
 0x20b   :  { %v903_v54 = vmax.f32 %v747_v8, 0.0 }
 0x20c   :  { %v904_v55 = vmax.f32 %v749_v44, 0.0 }
 0x20d   :  { %v965_v56 = vpack.c.bf16 %v903_v54, %v901_v47 }
 0x20e   :  { %v966_v22 = vpack.c.bf16 %v904_v55, %v902_v23  ;;  %v752_v25 = vpop.f32.mrb[36].mxu1 }
 0x20f   :  { %v753_v57 = vadd.f32 %v752_v25, %v2000_v63  ;;  %v754_v58 = vpop.f32.mrb[37].mxu1 }
 0x210   :  { %v755_v59 = vadd.f32 %v754_v58, %v2004_v33  ;;  %v756_v61 = vpop.f32.mrb[38].mxu1  ;;  %1164 = vmatprep.mubr.bf16.mxu0 %v966_v22 }
 0x211   :  { %v757_v62 = vadd.f32 %v756_v61, %v2000_v63  ;;  %v758_v1 = vpop.f32.mrb[39].mxu1  ;;  %1165 = vmatmul.mubr.bf16.vlgmr.msra.gmra.mrb[32].mxu0 %v965_v56  ;;  %v905_v3 = vmax.f32 %v753_v57, 0.0 }
 0x212   :  { %v759_v2 = vadd.f32 %v758_v1, %v2004_v33  ;;  %v906_v6 = vmax.f32 %v755_v59, 0.0 }
 0x213   :  { %v907_v5 = vmax.f32 %v757_v62, 0.0 }
 0x214   :  { %v908_v9 = vmax.f32 %v759_v2, 0.0 }
 0x215   :  { %v967_v10 = vpack.c.bf16 %v907_v5, %v905_v3 }
 0x216   :  { %v968_v12 = vpack.c.bf16 %v908_v9, %v906_v6  ;;  %v762_v13 = vpop.f32.mrb[40].mxu1 }
 0x217   :  { %v763_v14 = vadd.f32 %v762_v13, %v2000_v63  ;;  %v764_v15 = vpop.f32.mrb[41].mxu1 }
 0x218   :  { %v765_v16 = vadd.f32 %v764_v15, %v2004_v33  ;;  %v766_v17 = vpop.f32.mrb[42].mxu1  ;;  %1172 = vmatprep.mubr.bf16.mxu0 %v968_v12 }
 0x219   :  { %v767_v18 = vadd.f32 %v766_v17, %v2000_v63  ;;  %v768_v19 = vpop.f32.mrb[43].mxu1  ;;  %1173 = vmatmul.mubr.bf16.gmra.mrb[36].mxu0 %v967_v10  ;;  %v909_v20 = vmax.f32 %v763_v14, 0.0 }
 0x21a   :  { %v769_v0 = vadd.f32 %v768_v19, %v2004_v33  ;;  %v910_v24 = vmax.f32 %v765_v16, 0.0 }
 0x21b   :  { %v911_v21 = vmax.f32 %v767_v18, 0.0 }
 0x21c   :  { %v912_v28 = vmax.f32 %v769_v0, 0.0 }
 0x21d   :  { %v969_v29 = vpack.c.bf16 %v911_v21, %v909_v20 }
 0x21e   :  { %v970_v30 = vpack.c.bf16 %v912_v28, %v910_v24  ;;  %v772_v31 = vpop.f32.mrb[44].mxu1 }
 0x21f   :  { %v773_v32 = vadd.f32 %v772_v31, %v2000_v63  ;;  %v774_v34 = vpop.f32.mrb[45].mxu1 }
 0x220   :  { %v775_v35 = vadd.f32 %v774_v34, %v2004_v33  ;;  %v776_v37 = vpop.f32.mrb[46].mxu1  ;;  %1180 = vmatprep.mubr.bf16.mxu0 %v970_v30 }
 0x221   :  { %v777_v38 = vadd.f32 %v776_v37, %v2000_v63  ;;  %v778_v40 = vpop.f32.mrb[47].mxu1  ;;  %1181 = vmatmul.mubr.bf16.gmra.mrb[40].mxu0 %v969_v29  ;;  %v913_v43 = vmax.f32 %v773_v32, 0.0 }
 0x222   :  { %v779_v41 = vadd.f32 %v778_v40, %v2004_v33  ;;  %v914_v46 = vmax.f32 %v775_v35, 0.0 }
 0x223   :  { %v915_v45 = vmax.f32 %v777_v38, 0.0 }
 0x224   :  { %v916_v48 = vmax.f32 %v779_v41, 0.0 }
 0x225   :  { %v971_v49 = vpack.c.bf16 %v915_v45, %v913_v43 }
 0x226   :  { %v972_v50 = vpack.c.bf16 %v916_v48, %v914_v46  ;;  %v782_v51 = vpop.f32.mrb[48].mxu1 }
 0x227   :  { %v783_v52 = vadd.f32 %v782_v51, %v2000_v63  ;;  %v784_v53 = vpop.f32.mrb[49].mxu1 }
 0x228   :  { %v785_v26 = vadd.f32 %v784_v53, %v2004_v33  ;;  %v786_v27 = vpop.f32.mrb[50].mxu1  ;;  %1188 = vmatprep.mubr.bf16.mxu0 %v972_v50 }
 0x229   :  { %v787_v60 = vadd.f32 %v786_v27, %v2000_v63  ;;  %v788_v36 = vpop.f32.mrb[51].mxu1  ;;  %1189 = vmatmul.mubr.bf16.gmra.mrb[44].mxu0 %v971_v49  ;;  %v917_v7 = vmax.f32 %v783_v52, 0.0 }
 0x22a   :  { %v789_v4 = vadd.f32 %v788_v36, %v2004_v33  ;;  %v918_v42 = vmax.f32 %v785_v26, 0.0 }
 0x22b   :  { %v919_v39 = vmax.f32 %v787_v60, 0.0 }
 0x22c   :  { %v920_v8 = vmax.f32 %v789_v4, 0.0 }
 0x22d   :  { %v973_v11 = vpack.c.bf16 %v919_v39, %v917_v7 }
 0x22e   :  { %v974_v44 = vpack.c.bf16 %v920_v8, %v918_v42  ;;  %v792_v47 = vpop.f32.mrb[52].mxu1 }
 0x22f   :  { %v793_v54 = vadd.f32 %v792_v47, %v2000_v63  ;;  %v794_v23 = vpop.f32.mrb[53].mxu1 }
 0x230   :  { %v795_v55 = vadd.f32 %v794_v23, %v2004_v33  ;;  %v796_v56 = vpop.f32.mrb[54].mxu1  ;;  %1196 = vmatprep.mubr.bf16.mxu0 %v974_v44 }
 0x231   :  { %v797_v22 = vadd.f32 %v796_v56, %v2000_v63  ;;  %v798_v25 = vpop.f32.mrb[55].mxu1  ;;  %1197 = vmatmul.mubr.bf16.gmra.mrb[48].mxu0 %v973_v11  ;;  %v921_v58 = vmax.f32 %v793_v54, 0.0 }
 0x232   :  { %v799_v57 = vadd.f32 %v798_v25, %v2004_v33  ;;  %v922_v61 = vmax.f32 %v795_v55, 0.0 }
 0x233   :  { %v923_v59 = vmax.f32 %v797_v22, 0.0 }
 0x234   :  { %v924_v62 = vmax.f32 %v799_v57, 0.0 }
 0x235   :  { %v975_v1 = vpack.c.bf16 %v923_v59, %v921_v58 }
 0x236   :  { %v976_v2 = vpack.c.bf16 %v924_v62, %v922_v61  ;;  %v802_v3 = vpop.f32.mrb[56].mxu1 }
 0x237   :  { %v803_v5 = vadd.f32 %v802_v3, %v2000_v63  ;;  %v804_v6 = vpop.f32.mrb[57].mxu1 }
 0x238   :  { %v805_v9 = vadd.f32 %v804_v6, %v2004_v33  ;;  %v806_v10 = vpop.f32.mrb[58].mxu1  ;;  %1204 = vmatprep.mubr.bf16.mxu0 %v976_v2 }
 0x239   :  { %v807_v12 = vadd.f32 %v806_v10, %v2000_v63  ;;  %v808_v13 = vpop.f32.mrb[59].mxu1  ;;  %1205 = vmatmul.mubr.bf16.gmra.mrb[52].mxu0 %v975_v1  ;;  %v925_v15 = vmax.f32 %v803_v5, 0.0 }
 0x23a   :  { %v809_v14 = vadd.f32 %v808_v13, %v2004_v33  ;;  %v926_v17 = vmax.f32 %v805_v9, 0.0 }
 0x23b   :  { %v927_v16 = vmax.f32 %v807_v12, 0.0 }
 0x23c   :  { %v928_v18 = vmax.f32 %v809_v14, 0.0 }
 0x23d   :  { %v977_v19 = vpack.c.bf16 %v927_v16, %v925_v15 }
 0x23e   :  { %v978_v0 = vpack.c.bf16 %v928_v18, %v926_v17  ;;  %v812_v20 = vpop.f32.mrb[60].mxu1 }
 0x23f   :  { %v813_v21 = vadd.f32 %v812_v20, %v2000_v63  ;;  %v814_v24 = vpop.f32.mrb[61].mxu1 }
 0x240   :  { %v815_v28 = vadd.f32 %v814_v24, %v2004_v33  ;;  %v816_v29 = vpop.f32.mrb[62].mxu1  ;;  %1212 = vmatprep.mubr.bf16.mxu0 %v978_v0 }
 0x241   :  { %v817_v30 = vadd.f32 %v816_v29, %v2000_v63  ;;  %v818_v31 = vpop.f32.mrb[63].mxu1  ;;  %1213 = vmatmul.mubr.bf16.gmra.mrb[56].mxu0 %v977_v19  ;;  %v929_v34 = vmax.f32 %v813_v21, 0.0 }
 0x242   :  { %v819_v32 = vadd.f32 %v818_v31, %v2004_v33  ;;  %v930_v37 = vmax.f32 %v815_v28, 0.0 }
 0x243   :  { %v931_v35 = vmax.f32 %v817_v30, 0.0 }
 0x244   :  { %v932_v38 = vmax.f32 %v819_v32, 0.0 }
 0x245   :  { %v979_v40 = vpack.c.bf16 %v931_v35, %v929_v34 }
 0x246   :  { %v980_v41 = vpack.c.bf16 %v932_v38, %v930_v37  ;;  %v822_v43 = vpop.f32.mrb[64].mxu1 }
 0x247   :  { %v823_v45 = vadd.f32 %v822_v43, %v2000_v63  ;;  %v824_v46 = vpop.f32.mrb[65].mxu1 }
 0x248   :  { %v825_v48 = vadd.f32 %v824_v46, %v2004_v33  ;;  %v826_v49 = vpop.f32.mrb[66].mxu1  ;;  %1220 = vmatprep.mubr.bf16.mxu0 %v980_v41 }
 0x249   :  { %v827_v50 = vadd.f32 %v826_v49, %v2000_v63  ;;  %v828_v51 = vpop.f32.mrb[67].mxu1  ;;  %1221 = vmatmul.mubr.bf16.gmra.mrb[60].mxu0 %v979_v40  ;;  %v933_v53 = vmax.f32 %v823_v45, 0.0 }
 0x24a   :  { %v829_v52 = vadd.f32 %v828_v51, %v2004_v33  ;;  %v934_v27 = vmax.f32 %v825_v48, 0.0 }
 0x24b   :  { %v935_v26 = vmax.f32 %v827_v50, 0.0 }
 0x24c   :  { %v936_v60 = vmax.f32 %v829_v52, 0.0 }
 0x24d   :  { %v981_v36 = vpack.c.bf16 %v935_v26, %v933_v53 }
 0x24e   :  { %v982_v4 = vpack.c.bf16 %v936_v60, %v934_v27  ;;  %v832_v7 = vpop.f32.mrb[68].mxu1 }
 0x24f   :  { %v833_v39 = vadd.f32 %v832_v7, %v2000_v63  ;;  %v834_v42 = vpop.f32.mrb[69].mxu1 }
 0x250   :  { %v835_v8 = vadd.f32 %v834_v42, %v2004_v33  ;;  %v836_v11 = vpop.f32.mrb[70].mxu1  ;;  %1228 = vmatprep.mubr.bf16.mxu0 %v982_v4 }
 0x251   :  { %v837_v44 = vadd.f32 %v836_v11, %v2000_v63  ;;  %v838_v47 = vpop.f32.mrb[71].mxu1  ;;  %1229 = vmatmul.mubr.bf16.gmra.mrb[64].mxu0 %v981_v36  ;;  %v937_v23 = vmax.f32 %v833_v39, 0.0 }
 0x252   :  { %v839_v54 = vadd.f32 %v838_v47, %v2004_v33  ;;  %v938_v56 = vmax.f32 %v835_v8, 0.0 }
 0x253   :  { %v939_v55 = vmax.f32 %v837_v44, 0.0 }
 0x254   :  { %v940_v22 = vmax.f32 %v839_v54, 0.0 }
 0x255   :  { %v983_v25 = vpack.c.bf16 %v939_v55, %v937_v23 }
 0x256   :  { %v984_v57 = vpack.c.bf16 %v940_v22, %v938_v56  ;;  %v842_v58 = vpop.f32.mrb[72].mxu1 }
 0x257   :  { %v843_v59 = vadd.f32 %v842_v58, %v2000_v63  ;;  %v844_v61 = vpop.f32.mrb[73].mxu1 }
 0x258   :  { %v845_v62 = vadd.f32 %v844_v61, %v2004_v33  ;;  %v846_v1 = vpop.f32.mrb[74].mxu1  ;;  %1236 = vmatprep.mubr.bf16.mxu0 %v984_v57 }
 0x259   :  { %v847_v2 = vadd.f32 %v846_v1, %v2000_v63  ;;  %v848_v3 = vpop.f32.mrb[75].mxu1  ;;  %1237 = vmatmul.mubr.bf16.gmra.mrb[68].mxu0 %v983_v25  ;;  %v941_v6 = vmax.f32 %v843_v59, 0.0 }
 0x25a   :  { %v849_v5 = vadd.f32 %v848_v3, %v2004_v33  ;;  %v942_v10 = vmax.f32 %v845_v62, 0.0 }
 0x25b   :  { %v943_v9 = vmax.f32 %v847_v2, 0.0 }
 0x25c   :  { %v944_v12 = vmax.f32 %v849_v5, 0.0 }
 0x25d   :  { %v985_v13 = vpack.c.bf16 %v943_v9, %v941_v6 }
 0x25e   :  { %v986_v14 = vpack.c.bf16 %v944_v12, %v942_v10  ;;  %v852_v15 = vpop.f32.mrb[76].mxu1 }
 0x25f   :  { %v853_v16 = vadd.f32 %v852_v15, %v2000_v63  ;;  %v854_v17 = vpop.f32.mrb[77].mxu1 }
 0x260   :  { %v855_v18 = vadd.f32 %v854_v17, %v2004_v33  ;;  %v856_v19 = vpop.f32.mrb[78].mxu1  ;;  %1244 = vmatprep.mubr.bf16.mxu0 %v986_v14 }
 0x261   :  { %v857_v0 = vadd.f32 %v856_v19, %v2000_v63  ;;  %v858_v20 = vpop.f32.mrb[79].mxu1  ;;  %1245 = vmatmul.mubr.bf16.gmra.mrb[72].mxu0 %v985_v13  ;;  %v945_v24 = vmax.f32 %v853_v16, 0.0 }
 0x262   :  { %v859_v21 = vadd.f32 %v858_v20, %v2004_v33  ;;  %v946_v29 = vmax.f32 %v855_v18, 0.0 }
 0x263   :  { %v947_v28 = vmax.f32 %v857_v0, 0.0 }
 0x264   :  { %v948_v30 = vmax.f32 %v859_v21, 0.0 }
 0x265   :  { %v987_v31 = vpack.c.bf16 %v947_v28, %v945_v24  ;;  %v1421_v28 = vld [vmem:[%s2082_s6] ss:$0 sm:$0xff] }
 0x266   :  { %v988_v32 = vpack.c.bf16 %v948_v30, %v946_v29  ;;  %v862_v34 = vpop.f32.mrb[80].mxu1 }
 0x267   :  { %v863_v35 = vadd.f32 %v862_v34, %v2000_v63  ;;  %v864_v37 = vpop.f32.mrb[81].mxu1 }
 0x268   :  { %v865_v38 = vadd.f32 %v864_v37, %v2004_v33  ;;  %v866_v40 = vpop.f32.mrb[82].mxu1  ;;  %1252 = vmatprep.mubr.bf16.mxu0 %v988_v32 }
 0x269   :  { %v867_v41 = vadd.f32 %v866_v40, %v2000_v63  ;;  %v868_v43 = vpop.f32.mrb[83].mxu1  ;;  %1253 = vmatmul.mubr.bf16.gmra.mrb[76].mxu0 %v987_v31  ;;  %v949_v46 = vmax.f32 %v863_v35, 0.0 }
 0x26a   :  { %v869_v45 = vadd.f32 %v868_v43, %v2004_v33  ;;  %v950_v49 = vmax.f32 %v865_v38, 0.0 }
 0x26b   :  { %v951_v48 = vmax.f32 %v867_v41, 0.0 }
 0x26c   :  { %v952_v50 = vmax.f32 %v869_v45, 0.0 }
 0x26d   :  { %v989_v51 = vpack.c.bf16 %v951_v48, %v949_v46 }
 0x26e   :  { %v990_v52 = vpack.c.bf16 %v952_v50, %v950_v49  ;;  %v872_v53 = vpop.f32.mrb[84].mxu1 }
 0x26f   :  { %v873_v26 = vadd.f32 %v872_v53, %v2000_v63  ;;  %v874_v27 = vpop.f32.mrb[85].mxu1 }
 0x270   :  { %v875_v60 = vadd.f32 %v874_v27, %v2004_v33  ;;  %v876_v36 = vpop.f32.mrb[86].mxu1  ;;  %1260 = vmatprep.mubr.bf16.mxu0 %v990_v52 }
 0x271   :  { %v877_v4 = vadd.f32 %v876_v36, %v2000_v63  ;;  %v878_v7 = vpop.f32.mrb[87].mxu1  ;;  %1261 = vmatmul.mubr.bf16.gmra.mrb[80].mxu0 %v989_v51  ;;  %v953_v42 = vmax.f32 %v873_v26, 0.0 }
 0x272   :  { %v879_v39 = vadd.f32 %v878_v7, %v2004_v33  ;;  %v954_v11 = vmax.f32 %v875_v60, 0.0 }
 0x273   :  { %v955_v8 = vmax.f32 %v877_v4, 0.0 }
 0x274   :  { %v956_v44 = vmax.f32 %v879_v39, 0.0 }
 0x275   :  { %v991_v47 = vpack.c.bf16 %v955_v8, %v953_v42 }
 0x276   :  { %v992_v54 = vpack.c.bf16 %v956_v44, %v954_v11  ;;  %v882_v23 = vpop.f32.mrb[88].mxu1 }
 0x277   :  { %v883_v55 = vadd.f32 %v882_v23, %v2000_v63  ;;  %v884_v56 = vpop.f32.mrb[89].mxu1 }
 0x278   :  { %v885_v22 = vadd.f32 %v884_v56, %v2004_v33  ;;  %v886_v25 = vpop.f32.mrb[90].mxu1  ;;  %1268 = vmatprep.mubr.bf16.mxu0 %v992_v54 }
 0x279   :  { %v887_v57 = vadd.f32 %v886_v25, %v2000_v63  ;;  %v888_v58 = vpop.f32.mrb[91].mxu1  ;;  %1269 = vmatmul.mubr.bf16.gmra.mrb[84].mxu0 %v991_v47  ;;  %v957_v61 = vmax.f32 %v883_v55, 0.0 }
 0x27a   :  { %v889_v59 = vadd.f32 %v888_v58, %v2004_v33  ;;  %v958_v1 = vmax.f32 %v885_v22, 0.0 }
 0x27b   :  { %v959_v62 = vmax.f32 %v887_v57, 0.0 }
 0x27c   :  { %v960_v2 = vmax.f32 %v889_v59, 0.0 }
 0x27d   :  { %v993_v3 = vpack.c.bf16 %v959_v62, %v957_v61 }
 0x27e   :  { %v994_v5 = vpack.c.bf16 %v960_v2, %v958_v1  ;;  %v892_v6 = vpop.f32.mrb[92].mxu1 }
 0x27f   :  { %v893_v9 = vadd.f32 %v892_v6, %v2000_v63  ;;  %v894_v10 = vpop.f32.mrb[93].mxu1 }
 0x280   :  { %v895_v12 = vadd.f32 %v894_v10, %v2004_v33  ;;  %v896_v13 = vpop.f32.mrb[94].mxu1  ;;  %1276 = vmatprep.mubr.bf16.mxu0 %v994_v5 }
 0x281   :  { %v897_v14 = vadd.f32 %v896_v13, %v2000_v63  ;;  %v898_v15 = vpop.f32.mrb[95].mxu1  ;;  %1277 = vmatmul.mubr.bf16.gmra.mrb[88].mxu0 %v993_v3  ;;  %v961_v17 = vmax.f32 %v893_v9, 0.0 }
 0x282   :  { %v899_v16 = vadd.f32 %v898_v15, %v2004_v33  ;;  %v962_v19 = vmax.f32 %v895_v12, 0.0 }
 0x283   :  { %v963_v18 = vmax.f32 %v897_v14, 0.0 }
 0x284   :  { %v964_v0 = vmax.f32 %v899_v16, 0.0 }
 0x285   :  { %v995_v20 = vpack.c.bf16 %v963_v18, %v961_v17 }
 0x286   :  { %v996_v21 = vpack.c.bf16 %v964_v0, %v962_v19 }
 0x288   :  { %1284 = vmatprep.mubr.bf16.mxu0 %v996_v21 }
 0x289   :  { %1285 = vmatmul.mubr.bf16.gmra.mrb[92].mxu0 %v995_v20 }
 0x2e4   :  { %v1454_v24 = vpop.f32.mrb[32].mxu0 }
 0x2e5   :  { %v1455_v29 = vpop.f32.mrb[33].mxu0 }
 0x2e6   :  { %v1456_v30 = vadd.f32 %v1455_v29, %v1454_v24  ;;  %v1457_v63 = vpop.f32.mrb[34].mxu0 }
 0x2e7   :  { %v1458_v31 = vpop.f32.mrb[35].mxu0 }
 0x2e8   :  { %v1167_v32 = vadd.f32 %v1456_v30, %v1421_v28 }
 0x2ea   :  { %1294 = vst.msk [vmem:[#allocation9] sm:$0xff] %vm1293_vm1, %v1167_v32 }
 0x2ec   :  { %v1460_v33 = vpop.f32.mrb[36].mxu0 }
 0x2ed   :  { %v1461_v34 = vpop.f32.mrb[37].mxu0 }
 0x2ee   :  { %v1463_v35 = vpop.f32.mrb[38].mxu0 }
 0x2ef   :  { %v1464_v37 = vpop.f32.mrb[39].mxu0 }
 0x2f1   :  { %v1355_v38 = vld [vmem:[#allocation9] sm:$0xff] }
 0x2f2   :  { %1356 = vst [vmem:[%s2083_s7] sm:$0xff] %v1355_v38 }
 0x2f4   :  { %v1466_v40 = vpop.f32.mrb[40].mxu0 }
 0x2f5   :  { %v1467_v41 = vpop.f32.mrb[41].mxu0 }
 0x2f6   :  { %v1469_v43 = vpop.f32.mrb[42].mxu0 }
 0x2f7   :  { %v1470_v45 = vpop.f32.mrb[43].mxu0 }
 0x2fc   :  { %v1472_v46 = vpop.f32.mrb[44].mxu0 }
 0x2fd   :  { %v1473_v48 = vpop.f32.mrb[45].mxu0 }
 0x2fe   :  { %v1475_v49 = vpop.f32.mrb[46].mxu0 }
 0x2ff   :  { %v1476_v50 = vpop.f32.mrb[47].mxu0 }
 0x304   :  { %v1478_v51 = vpop.f32.mrb[48].mxu0 }
 0x305   :  { %v1479_v52 = vpop.f32.mrb[49].mxu0 }
 0x306   :  { %v1481_v53 = vpop.f32.mrb[50].mxu0 }
 0x307   :  { %v1482_v26 = vpop.f32.mrb[51].mxu0 }
 0x30c   :  { %v1484_v27 = vpop.f32.mrb[52].mxu0 }
 0x30d   :  { %v1485_v60 = vpop.f32.mrb[53].mxu0 }
 0x30e   :  { %v1487_v36 = vpop.f32.mrb[54].mxu0 }
 0x30f   :  { %v1488_v4 = vpop.f32.mrb[55].mxu0 }
 0x314   :  { %v1490_v7 = vpop.f32.mrb[56].mxu0 }
 0x315   :  { %v1491_v39 = vpop.f32.mrb[57].mxu0 }
 0x316   :  { %v1493_v42 = vpop.f32.mrb[58].mxu0 }
 0x317   :  { %v1494_v8 = vpop.f32.mrb[59].mxu0 }
 0x31c   :  { %v1496_v11 = vpop.f32.mrb[60].mxu0 }
 0x31d   :  { %v1497_v44 = vpop.f32.mrb[61].mxu0 }
 0x31e   :  { %v1499_v47 = vpop.f32.mrb[62].mxu0 }
 0x31f   :  { %v1500_v54 = vpop.f32.mrb[63].mxu0 }
 0x324   :  { %v1502_v23 = vpop.f32.mrb[64].mxu0 }
 0x325   :  { %v1503_v55 = vpop.f32.mrb[65].mxu0 }
 0x326   :  { %v1505_v56 = vpop.f32.mrb[66].mxu0 }
 0x327   :  { %v1506_v22 = vpop.f32.mrb[67].mxu0 }
 0x32c   :  { %v1508_v25 = vpop.f32.mrb[68].mxu0 }
 0x32d   :  { %v1509_v57 = vpop.f32.mrb[69].mxu0 }
 0x32e   :  { %v1511_v58 = vpop.f32.mrb[70].mxu0 }
 0x32f   :  { %v1512_v59 = vpop.f32.mrb[71].mxu0 }
 0x334   :  { %v1514_v61 = vpop.f32.mrb[72].mxu0 }
 0x335   :  { %v1515_v62 = vpop.f32.mrb[73].mxu0 }
 0x336   :  { %v1517_v1 = vpop.f32.mrb[74].mxu0 }
 0x337   :  { %v1518_v2 = vpop.f32.mrb[75].mxu0 }
 0x33c   :  { %v1520_v3 = vpop.f32.mrb[76].mxu0 }
 0x33d   :  { %v1521_v5 = vpop.f32.mrb[77].mxu0 }
 0x33e   :  { %v1523_v6 = vpop.f32.mrb[78].mxu0 }
 0x33f   :  { %v1524_v9 = vpop.f32.mrb[79].mxu0 }
 0x344   :  { %v1526_v10 = vpop.f32.mrb[80].mxu0 }
 0x345   :  { %v1527_v12 = vpop.f32.mrb[81].mxu0 }
 0x346   :  { %v1529_v13 = vpop.f32.mrb[82].mxu0 }
 0x347   :  { %v1530_v14 = vpop.f32.mrb[83].mxu0 }
 0x34c   :  { %v1532_v15 = vpop.f32.mrb[84].mxu0 }
 0x34d   :  { %v1533_v16 = vpop.f32.mrb[85].mxu0 }
 0x34e   :  { %v1535_v17 = vpop.f32.mrb[86].mxu0 }
 0x34f   :  { %v1536_v18 = vpop.f32.mrb[87].mxu0 }
 0x354   :  { %v1538_v19 = vpop.f32.mrb[88].mxu0 }
 0x355   :  { %v1539_v0 = vpop.f32.mrb[89].mxu0 }
 0x356   :  { %v1541_v20 = vpop.f32.mrb[90].mxu0 }
 0x357   :  { %v1542_v21 = vpop.f32.mrb[91].mxu0 }
 0x35c   :  { %v1544_v24 = vpop.f32.mrb[92].mxu0 }
 0x35d   :  { %v1545_v28 = vpop.f32.mrb[93].mxu0 }
 0x35e   :  { %v1547_v29 = vpop.f32.mrb[94].mxu0 }
 0x35f   :  { %v1548_v30 = vpop.f32.mrb[95].mxu0 }
 0x360   :  { %1362 = vsyncpa [#allocation3], 1 }
 0x361   :  { %1363 = vsyncpa [#allocation5], 1 }
 0x362   :  { %1364 = vsyncpa [#allocation8], 1 }

</bundles_post_ra>
